<compile_context>
chip_gen: v5e
topology: v5e:2x2
jax: 0.10.0
libtpu: 0.0.40
codegen_flags: <defaults>
</compile_context>

<pallas_src>
import functools

import jax
import jax.numpy as jnp
from jax import lax
from jax.experimental import pallas as pl
from jax.experimental.pallas import tpu as pltpu

LANE = 128


def _vmem_limit_bytes():
    """Scoped-VMEM request: generous on 128-MiB generations, safe on v7x."""
    try:
        kind = jax.devices()[0].device_kind.lower()
    except Exception:
        return 32 * 1024 * 1024
    if ("v4" in kind) or ("v5" in kind) or ("v6" in kind):
        return 96 * 1024 * 1024      # 128 MiB physical VMEM on these chips
    return 32 * 1024 * 1024          # v7x (64 MiB physical) / unknown / CPU


# ---------------------------------------------------------------------------
# Fast path: S = D*H*W is a multiple of 128.
# Layout (N, C, Sr, 128): spatial fills sublanes AND lanes, the channel
# reduction is cross-vreg VPU adds (no XLU reduce), output stores are
# lane-dense.
# ---------------------------------------------------------------------------
def _ln3d_rows_kernel(x_ref, g_ref, b_ref, o_ref, mean_ref, inv_ref, *, eps):
    # x_ref / o_ref : (1, C, Tr, 128)
    # g_ref / b_ref : (C,) float32 in SMEM (scalar splats, no broadcasts)
    # mean_ref / inv_ref : (Tr, 128) float32 VMEM scratch
    C = x_ref.shape[1]
    inv_c = 1.0 / C
    unroll = C <= 16

    # Pass 1: channel sum -> mean.  Streaming one channel at a time keeps the
    # live f32 footprint O(Tr*128), independent of C.
    mean_ref[...] = jnp.zeros_like(mean_ref)

    def _p1(c, carry):
        mean_ref[...] += x_ref[0, c].astype(jnp.float32)
        return carry

    lax.fori_loop(0, C, _p1, 0, unroll=unroll)
    mean_ref[...] *= inv_c

    # Pass 2: centered sum of squares -> 1/(std+eps).  Two-pass variance
    # (re-reading x from VMEM) avoids E[x^2]-mean^2 cancellation; VMEM
    # re-reads are free in this HBM-bound kernel.
    inv_ref[...] = jnp.zeros_like(inv_ref)

    def _p2(c, carry):
        d = x_ref[0, c].astype(jnp.float32) - mean_ref[...]
        inv_ref[...] += d * d
        return carry

    lax.fori_loop(0, C, _p2, 0, unroll=unroll)
    inv_ref[...] = 1.0 / (jnp.sqrt(inv_ref[...] * inv_c) + eps)  # eps on std

    # Pass 3: normalize, per-channel affine (SMEM scalar splat), write.
    def _p3(c, carry):
        xc = x_ref[0, c].astype(jnp.float32) - mean_ref[...]
        y = xc * inv_ref[...] * g_ref[c] + b_ref[c]
        o_ref[0, c] = y.astype(o_ref.dtype)
        return carry

    lax.fori_loop(0, C, _p3, 0, unroll=unroll)


def _layernorm3d_rows(x, g, b, eps):
    N, C, D, H, W = x.shape
    S = D * H * W
    Sr = S // LANE                                # exact: S % 128 == 0
    itemsize = jnp.dtype(x.dtype).itemsize
    sub = max(8, 32 // itemsize)                  # 8 f32 / 16 bf16 / 32 int8

    limit = _vmem_limit_bytes()
    usable = int(limit * 0.7)                     # headroom for Mosaic scratch
    # Bytes of VMEM per tile row: in+out double-buffered pipeline blocks plus
    # ~3 live (Tr,128) f32 arrays in the kernel (mean, inv, streamed chunk).
    per_row = 4 * C * LANE * itemsize + 3 * LANE * 4
    tr_max = max(sub, (usable // per_row) // sub * sub)
    tr_max = min(tr_max, 4096)
    # Tiny-volume corner (Sr < 8): a full-extent block is legal, it just
    # under-fills sublanes.  TODO(synk): fold N into the row dim if this case
    # ever matters for throughput.
    Tr = Sr if Sr <= tr_max else tr_max

    x4 = x.reshape(N, C, Sr, LANE)                # contiguous reshape: no copy
    g1 = g.reshape(C).astype(jnp.float32)
    b1 = b.reshape(C).astype(jnp.float32)

    grid = (pl.cdiv(Sr, Tr), N)                   # spatial axis leads (megacore)

    out = pl.pallas_call(
        functools.partial(_ln3d_rows_kernel, eps=eps),
        out_shape=jax.ShapeDtypeStruct((N, C, Sr, LANE), x.dtype),
        grid=grid,
        in_specs=[
            pl.BlockSpec((1, C, Tr, LANE), lambda s, n: (n, 0, s, 0)),
            pl.BlockSpec(memory_space=pltpu.MemorySpace.SMEM),
            pl.BlockSpec(memory_space=pltpu.MemorySpace.SMEM),
        ],
        out_specs=pl.BlockSpec((1, C, Tr, LANE), lambda s, n: (n, 0, s, 0)),
        scratch_shapes=[
            pltpu.VMEM((Tr, LANE), jnp.float32),   # mean accumulator
            pltpu.VMEM((Tr, LANE), jnp.float32),   # ssq / inv-std
        ],
        compiler_params=pltpu.CompilerParams(
            dimension_semantics=("parallel", "parallel"),
            vmem_limit_bytes=limit,
        ),
    )(x4, g1, b1)
    return out.reshape(N, C, D, H, W)


# ---------------------------------------------------------------------------
# Ragged path: S not a multiple of 128.  Keep (N, C, S), tile the flat
# spatial axis with 128-multiple blocks and let Pallas mask the partial edge
# block -- no jnp.pad and no output slice (each would be a full extra HBM
# read+write of the tensor).
# ---------------------------------------------------------------------------
def _ln3d_flat_kernel(x_ref, g_ref, b_ref, o_ref, *, eps):
    # x_ref / o_ref : (1, C, TS);  g_ref / b_ref : (C, 1) float32
    xf = x_ref[0].astype(jnp.float32)                       # (C, TS)
    mean = jnp.mean(xf, axis=0, keepdims=True)
    xc = xf - mean
    var = jnp.mean(xc * xc, axis=0, keepdims=True)          # unbiased=False
    inv = 1.0 / (jnp.sqrt(var) + eps)                       # eps added to std
    o_ref[0] = (xc * inv * g_ref[...] + b_ref[...]).astype(o_ref.dtype)


def _layernorm3d_flat(x, g, b, eps):
    N, C, D, H, W = x.shape
    S = D * H * W
    itemsize = jnp.dtype(x.dtype).itemsize

    limit = _vmem_limit_bytes()
    usable = int(limit * 0.7)
    # Bytes per spatial column: in+out double-buffered + ~3 (C,TS) f32 temps.
    per_col = 4 * C * itemsize + 3 * C * 4
    ts_max = max(LANE, (usable // per_col) // LANE * LANE)
    ts_max = min(ts_max, 32768)
    TS = S if S <= ts_max else ts_max             # full-extent block is legal

    x3 = x.reshape(N, C, S)                       # contiguous reshape: no copy
    g1 = g.reshape(C, 1).astype(jnp.float32)
    b1 = b.reshape(C, 1).astype(jnp.float32)
    grid = (pl.cdiv(S, TS), N)

    out = pl.pallas_call(
        functools.partial(_ln3d_flat_kernel, eps=eps),
        out_shape=jax.ShapeDtypeStruct((N, C, S), x.dtype),
        grid=grid,
        in_specs=[
            pl.BlockSpec((1, C, TS), lambda s, n: (n, 0, s)),
            pl.BlockSpec((C, 1), lambda s, n: (0, 0)),
            pl.BlockSpec((C, 1), lambda s, n: (0, 0)),
        ],
        out_specs=pl.BlockSpec((1, C, TS), lambda s, n: (n, 0, s)),
        compiler_params=pltpu.CompilerParams(
            dimension_semantics=("parallel", "parallel"),
            vmem_limit_bytes=limit,
        ),
    )(x3, g1, b1)
    return out.reshape(N, C, D, H, W)


def layernorm3d(x, g, b, eps=1e-5):
    """x: (N, C, D, H, W); g, b: (1, C, 1, 1, 1).  Returns x.shape / x.dtype."""
    N, C, D, H, W = x.shape
    if (D * H * W) % LANE == 0:
        return _layernorm3d_rows(x, g, b, eps)
    return _layernorm3d_flat(x, g, b, eps)


def layernorm3d_ref(x, g, b, eps=1e-5):
    mean = jnp.mean(x, axis=1, keepdims=True)
    var = jnp.mean((x - mean) ** 2, axis=1, keepdims=True)
    return (x - mean) / (jnp.sqrt(var) + eps) * g + b


if __name__ == "__main__":
    key = jax.random.PRNGKey(0)
    eps = 1e-5
    k1, k2 = jax.random.split(key)

    # Case 1 (fast path): D*H*W is a multiple of 128.
    N, C, D, H, W = 2, 4, 8, 8, 8
    x = jax.random.normal(k1, (N, C, D, H, W), dtype=jnp.float32)
    g = jnp.ones((1, C, 1, 1, 1), jnp.float32) + 0.1 * jnp.arange(
        C, dtype=jnp.float32).reshape(1, C, 1, 1, 1)
    b = 0.05 * jnp.arange(C, dtype=jnp.float32).reshape(1, C, 1, 1, 1)
    out = jax.block_until_ready(layernorm3d(x, g, b, eps))
    ref = layernorm3d_ref(x, g, b, eps)
    assert out.shape == x.shape and out.dtype == x.dtype
    assert jnp.allclose(out, ref, atol=1e-4, rtol=1e-4), "fast-path mismatch"

    # Case 2 (ragged path): D*H*W not a multiple of 128 (no pad / slice).
    N2, C2, D2, H2, W2 = 1, 8, 5, 5, 5
    x2 = jax.random.normal(k2, (N2, C2, D2, H2, W2), dtype=jnp.float32)
    g2 = jnp.ones((1, C2, 1, 1, 1), jnp.float32) + 0.1 * jnp.arange(
        C2, dtype=jnp.float32).reshape(1, C2, 1, 1, 1)
    b2 = 0.05 * jnp.arange(C2, dtype=jnp.float32).reshape(1, C2, 1, 1, 1)
    out2 = jax.block_until_ready(layernorm3d(x2, g2, b2, eps))
    ref2 = layernorm3d_ref(x2, g2, b2, eps)
    assert out2.shape == x2.shape and out2.dtype == x2.dtype
    assert jnp.allclose(out2, ref2, atol=1e-4, rtol=1e-4), "ragged-path mismatch"

    print("KERNEL_OK")
</pallas_src>

<mosaic_0001>
module attributes {stable_mosaic.version = 11 : i64} {
  func.func @_ln3d_rows_kernel(%arg0: i32, %arg1: i32, %arg2: memref<1x4x4x128xf32, #tpu.memory_space<vmem>>, %arg3: memref<4xf32, #tpu.memory_space<smem>>, %arg4: memref<4xf32, #tpu.memory_space<smem>>, %arg5: memref<1x4x4x128xf32, #tpu.memory_space<vmem>>, %arg6: memref<4x128xf32, #tpu.memory_space<vmem>>, %arg7: memref<4x128xf32, #tpu.memory_space<vmem>>) attributes {dimension_semantics = [#tpu.dimension_semantics<parallel>, #tpu.dimension_semantics<parallel>], iteration_bounds = array<i64: 1, 2>, scalar_prefetch = 0 : i64, scratch_operands = 2 : i64, tpu.core_type = #tpu.core_type<tc>, window_params = [{transform_indices = @transform_0, window_bounds = array<i64: 1, 4, 4, 128>}, {transform_indices = @transform_1, window_bounds = array<i64: 4>}, {transform_indices = @transform_2, window_bounds = array<i64: 4>}, {transform_indices = @transform_3, window_bounds = array<i64: 1, 4, 4, 128>}]} {
    %cst = arith.constant 0.000000e+00 : f32
    %0 = vector.broadcast %cst : f32 to vector<4x128xf32>
    %c0 = arith.constant 0 : index
    %c0_0 = arith.constant 0 : index
    %1 = vector.load %arg6[%c0, %c0_0] : memref<4x128xf32, #tpu.memory_space<vmem>>, vector<4x128xf32>
    tpu.vector_store %arg6[%c0, %c0_0], %0 {strides = array<i32>} : memref<4x128xf32, #tpu.memory_space<vmem>>, vector<4x128xf32>,
    %c0_i32 = arith.constant 0 : i32
    %c0_1 = arith.constant 0 : index
    %c0_2 = arith.constant 0 : index
    %2 = vector.load %arg6[%c0_1, %c0_2] : memref<4x128xf32, #tpu.memory_space<vmem>>, vector<4x128xf32>
    %c0_3 = arith.constant 0 : index
    %3 = arith.index_cast %c0_i32 : i32 to index
    %c0_4 = arith.constant 0 : index
    %c0_5 = arith.constant 0 : index
    %4 = vector.load %arg2[%c0_3, %3, %c0_4, %c0_5] : memref<1x4x4x128xf32, #tpu.memory_space<vmem>>, vector<1x1x4x128xf32>
    %5 = vector.shape_cast %4 : vector<1x1x4x128xf32> to vector<4x128xf32>
    %6 = arith.addf %2, %5 : vector<4x128xf32>
    %c0_6 = arith.constant 0 : index
    %c0_7 = arith.constant 0 : index
    %7 = vector.load %arg6[%c0_6, %c0_7] : memref<4x128xf32, #tpu.memory_space<vmem>>, vector<4x128xf32>
    tpu.vector_store %arg6[%c0_6, %c0_7], %6 {strides = array<i32>} : memref<4x128xf32, #tpu.memory_space<vmem>>, vector<4x128xf32>,
    %c1_i32 = arith.constant 1 : i32
    %c0_8 = arith.constant 0 : index
    %c0_9 = arith.constant 0 : index
    %8 = vector.load %arg6[%c0_8, %c0_9] : memref<4x128xf32, #tpu.memory_space<vmem>>, vector<4x128xf32>
    %c0_10 = arith.constant 0 : index
    %9 = arith.index_cast %c1_i32 : i32 to index
    %c0_11 = arith.constant 0 : index
    %c0_12 = arith.constant 0 : index
    %10 = vector.load %arg2[%c0_10, %9, %c0_11, %c0_12] : memref<1x4x4x128xf32, #tpu.memory_space<vmem>>, vector<1x1x4x128xf32>
    %11 = vector.shape_cast %10 : vector<1x1x4x128xf32> to vector<4x128xf32>
    %12 = arith.addf %8, %11 : vector<4x128xf32>
    %c0_13 = arith.constant 0 : index
    %c0_14 = arith.constant 0 : index
    %13 = vector.load %arg6[%c0_13, %c0_14] : memref<4x128xf32, #tpu.memory_space<vmem>>, vector<4x128xf32>
    tpu.vector_store %arg6[%c0_13, %c0_14], %12 {strides = array<i32>} : memref<4x128xf32, #tpu.memory_space<vmem>>, vector<4x128xf32>,
    %c2_i32 = arith.constant 2 : i32
    %c0_15 = arith.constant 0 : index
    %c0_16 = arith.constant 0 : index
    %14 = vector.load %arg6[%c0_15, %c0_16] : memref<4x128xf32, #tpu.memory_space<vmem>>, vector<4x128xf32>
    %c0_17 = arith.constant 0 : index
    %15 = arith.index_cast %c2_i32 : i32 to index
    %c0_18 = arith.constant 0 : index
    %c0_19 = arith.constant 0 : index
    %16 = vector.load %arg2[%c0_17, %15, %c0_18, %c0_19] : memref<1x4x4x128xf32, #tpu.memory_space<vmem>>, vector<1x1x4x128xf32>
    %17 = vector.shape_cast %16 : vector<1x1x4x128xf32> to vector<4x128xf32>
    %18 = arith.addf %14, %17 : vector<4x128xf32>
    %c0_20 = arith.constant 0 : index
    %c0_21 = arith.constant 0 : index
    %19 = vector.load %arg6[%c0_20, %c0_21] : memref<4x128xf32, #tpu.memory_space<vmem>>, vector<4x128xf32>
    tpu.vector_store %arg6[%c0_20, %c0_21], %18 {strides = array<i32>} : memref<4x128xf32, #tpu.memory_space<vmem>>, vector<4x128xf32>,
    %c3_i32 = arith.constant 3 : i32
    %c0_22 = arith.constant 0 : index
    %c0_23 = arith.constant 0 : index
    %20 = vector.load %arg6[%c0_22, %c0_23] : memref<4x128xf32, #tpu.memory_space<vmem>>, vector<4x128xf32>
    %c0_24 = arith.constant 0 : index
    %21 = arith.index_cast %c3_i32 : i32 to index
    %c0_25 = arith.constant 0 : index
    %c0_26 = arith.constant 0 : index
    %22 = vector.load %arg2[%c0_24, %21, %c0_25, %c0_26] : memref<1x4x4x128xf32, #tpu.memory_space<vmem>>, vector<1x1x4x128xf32>
    %23 = vector.shape_cast %22 : vector<1x1x4x128xf32> to vector<4x128xf32>
    %24 = arith.addf %20, %23 : vector<4x128xf32>
    %c0_27 = arith.constant 0 : index
    %c0_28 = arith.constant 0 : index
    %25 = vector.load %arg6[%c0_27, %c0_28] : memref<4x128xf32, #tpu.memory_space<vmem>>, vector<4x128xf32>
    tpu.vector_store %arg6[%c0_27, %c0_28], %24 {strides = array<i32>} : memref<4x128xf32, #tpu.memory_space<vmem>>, vector<4x128xf32>,
    %c4_i32 = arith.constant 4 : i32
    %c0_29 = arith.constant 0 : index
    %c0_30 = arith.constant 0 : index
    %26 = vector.load %arg6[%c0_29, %c0_30] : memref<4x128xf32, #tpu.memory_space<vmem>>, vector<4x128xf32>
    %cst_31 = arith.constant 2.500000e-01 : f32
    %27 = vector.broadcast %cst_31 : f32 to vector<4x128xf32>
    %28 = arith.mulf %26, %27 : vector<4x128xf32>
    %c0_32 = arith.constant 0 : index
    %c0_33 = arith.constant 0 : index
    %29 = vector.load %arg6[%c0_32, %c0_33] : memref<4x128xf32, #tpu.memory_space<vmem>>, vector<4x128xf32>
    tpu.vector_store %arg6[%c0_32, %c0_33], %28 {strides = array<i32>} : memref<4x128xf32, #tpu.memory_space<vmem>>, vector<4x128xf32>,
    %cst_34 = arith.constant 0.000000e+00 : f32
    %30 = vector.broadcast %cst_34 : f32 to vector<4x128xf32>
    %c0_35 = arith.constant 0 : index
    %c0_36 = arith.constant 0 : index
    %31 = vector.load %arg7[%c0_35, %c0_36] : memref<4x128xf32, #tpu.memory_space<vmem>>, vector<4x128xf32>
    tpu.vector_store %arg7[%c0_35, %c0_36], %30 {strides = array<i32>} : memref<4x128xf32, #tpu.memory_space<vmem>>, vector<4x128xf32>,
    %c0_i32_37 = arith.constant 0 : i32
    %c0_38 = arith.constant 0 : index
    %32 = arith.index_cast %c0_i32_37 : i32 to index
    %c0_39 = arith.constant 0 : index
    %c0_40 = arith.constant 0 : index
    %33 = vector.load %arg2[%c0_38, %32, %c0_39, %c0_40] : memref<1x4x4x128xf32, #tpu.memory_space<vmem>>, vector<1x1x4x128xf32>
    %34 = vector.shape_cast %33 : vector<1x1x4x128xf32> to vector<4x128xf32>
    %c0_41 = arith.constant 0 : index
    %c0_42 = arith.constant 0 : index
    %35 = vector.load %arg6[%c0_41, %c0_42] : memref<4x128xf32, #tpu.memory_space<vmem>>, vector<4x128xf32>
    %36 = arith.subf %34, %35 : vector<4x128xf32>
    %c0_43 = arith.constant 0 : index
    %c0_44 = arith.constant 0 : index
    %37 = vector.load %arg7[%c0_43, %c0_44] : memref<4x128xf32, #tpu.memory_space<vmem>>, vector<4x128xf32>
    %38 = arith.mulf %36, %36 : vector<4x128xf32>
    %39 = arith.addf %37, %38 : vector<4x128xf32>
    %c0_45 = arith.constant 0 : index
    %c0_46 = arith.constant 0 : index
    %40 = vector.load %arg7[%c0_45, %c0_46] : memref<4x128xf32, #tpu.memory_space<vmem>>, vector<4x128xf32>
    tpu.vector_store %arg7[%c0_45, %c0_46], %39 {strides = array<i32>} : memref<4x128xf32, #tpu.memory_space<vmem>>, vector<4x128xf32>,
    %c1_i32_47 = arith.constant 1 : i32
    %c0_48 = arith.constant 0 : index
    %41 = arith.index_cast %c1_i32_47 : i32 to index
    %c0_49 = arith.constant 0 : index
    %c0_50 = arith.constant 0 : index
    %42 = vector.load %arg2[%c0_48, %41, %c0_49, %c0_50] : memref<1x4x4x128xf32, #tpu.memory_space<vmem>>, vector<1x1x4x128xf32>
    %43 = vector.shape_cast %42 : vector<1x1x4x128xf32> to vector<4x128xf32>
    %c0_51 = arith.constant 0 : index
    %c0_52 = arith.constant 0 : index
    %44 = vector.load %arg6[%c0_51, %c0_52] : memref<4x128xf32, #tpu.memory_space<vmem>>, vector<4x128xf32>
    %45 = arith.subf %43, %44 : vector<4x128xf32>
    %c0_53 = arith.constant 0 : index
    %c0_54 = arith.constant 0 : index
    %46 = vector.load %arg7[%c0_53, %c0_54] : memref<4x128xf32, #tpu.memory_space<vmem>>, vector<4x128xf32>
    %47 = arith.mulf %45, %45 : vector<4x128xf32>
    %48 = arith.addf %46, %47 : vector<4x128xf32>
    %c0_55 = arith.constant 0 : index
    %c0_56 = arith.constant 0 : index
    %49 = vector.load %arg7[%c0_55, %c0_56] : memref<4x128xf32, #tpu.memory_space<vmem>>, vector<4x128xf32>
    tpu.vector_store %arg7[%c0_55, %c0_56], %48 {strides = array<i32>} : memref<4x128xf32, #tpu.memory_space<vmem>>, vector<4x128xf32>,
    %c2_i32_57 = arith.constant 2 : i32
    %c0_58 = arith.constant 0 : index
    %50 = arith.index_cast %c2_i32_57 : i32 to index
    %c0_59 = arith.constant 0 : index
    %c0_60 = arith.constant 0 : index
    %51 = vector.load %arg2[%c0_58, %50, %c0_59, %c0_60] : memref<1x4x4x128xf32, #tpu.memory_space<vmem>>, vector<1x1x4x128xf32>
    %52 = vector.shape_cast %51 : vector<1x1x4x128xf32> to vector<4x128xf32>
    %c0_61 = arith.constant 0 : index
    %c0_62 = arith.constant 0 : index
    %53 = vector.load %arg6[%c0_61, %c0_62] : memref<4x128xf32, #tpu.memory_space<vmem>>, vector<4x128xf32>
    %54 = arith.subf %52, %53 : vector<4x128xf32>
    %c0_63 = arith.constant 0 : index
    %c0_64 = arith.constant 0 : index
    %55 = vector.load %arg7[%c0_63, %c0_64] : memref<4x128xf32, #tpu.memory_space<vmem>>, vector<4x128xf32>
    %56 = arith.mulf %54, %54 : vector<4x128xf32>
    %57 = arith.addf %55, %56 : vector<4x128xf32>
    %c0_65 = arith.constant 0 : index
    %c0_66 = arith.constant 0 : index
    %58 = vector.load %arg7[%c0_65, %c0_66] : memref<4x128xf32, #tpu.memory_space<vmem>>, vector<4x128xf32>
    tpu.vector_store %arg7[%c0_65, %c0_66], %57 {strides = array<i32>} : memref<4x128xf32, #tpu.memory_space<vmem>>, vector<4x128xf32>,
    %c3_i32_67 = arith.constant 3 : i32
    %c0_68 = arith.constant 0 : index
    %59 = arith.index_cast %c3_i32_67 : i32 to index
    %c0_69 = arith.constant 0 : index
    %c0_70 = arith.constant 0 : index
    %60 = vector.load %arg2[%c0_68, %59, %c0_69, %c0_70] : memref<1x4x4x128xf32, #tpu.memory_space<vmem>>, vector<1x1x4x128xf32>
    %61 = vector.shape_cast %60 : vector<1x1x4x128xf32> to vector<4x128xf32>
    %c0_71 = arith.constant 0 : index
    %c0_72 = arith.constant 0 : index
    %62 = vector.load %arg6[%c0_71, %c0_72] : memref<4x128xf32, #tpu.memory_space<vmem>>, vector<4x128xf32>
    %63 = arith.subf %61, %62 : vector<4x128xf32>
    %c0_73 = arith.constant 0 : index
    %c0_74 = arith.constant 0 : index
    %64 = vector.load %arg7[%c0_73, %c0_74] : memref<4x128xf32, #tpu.memory_space<vmem>>, vector<4x128xf32>
    %65 = arith.mulf %63, %63 : vector<4x128xf32>
    %66 = arith.addf %64, %65 : vector<4x128xf32>
    %c0_75 = arith.constant 0 : index
    %c0_76 = arith.constant 0 : index
    %67 = vector.load %arg7[%c0_75, %c0_76] : memref<4x128xf32, #tpu.memory_space<vmem>>, vector<4x128xf32>
    tpu.vector_store %arg7[%c0_75, %c0_76], %66 {strides = array<i32>} : memref<4x128xf32, #tpu.memory_space<vmem>>, vector<4x128xf32>,
    %c4_i32_77 = arith.constant 4 : i32
    %c0_78 = arith.constant 0 : index
    %c0_79 = arith.constant 0 : index
    %68 = vector.load %arg7[%c0_78, %c0_79] : memref<4x128xf32, #tpu.memory_space<vmem>>, vector<4x128xf32>
    %cst_80 = arith.constant 2.500000e-01 : f32
    %69 = vector.broadcast %cst_80 : f32 to vector<4x128xf32>
    %70 = arith.mulf %68, %69 : vector<4x128xf32>
    %71 = math.sqrt %70 : vector<4x128xf32>
    %cst_81 = arith.constant 9.99999974E-6 : f32
    %72 = vector.broadcast %cst_81 : f32 to vector<4x128xf32>
    %73 = arith.addf %71, %72 : vector<4x128xf32>
    %cst_82 = arith.constant 1.000000e+00 : f32
    %74 = vector.broadcast %cst_82 : f32 to vector<4x128xf32>
    %75 = arith.divf %74, %73 : vector<4x128xf32>
    %c0_83 = arith.constant 0 : index
    %c0_84 = arith.constant 0 : index
    %76 = vector.load %arg7[%c0_83, %c0_84] : memref<4x128xf32, #tpu.memory_space<vmem>>, vector<4x128xf32>
    tpu.vector_store %arg7[%c0_83, %c0_84], %75 {strides = array<i32>} : memref<4x128xf32, #tpu.memory_space<vmem>>, vector<4x128xf32>,
    %c0_i32_85 = arith.constant 0 : i32
    %c0_86 = arith.constant 0 : index
    %77 = arith.index_cast %c0_i32_85 : i32 to index
    %c0_87 = arith.constant 0 : index
    %c0_88 = arith.constant 0 : index
    %78 = vector.load %arg2[%c0_86, %77, %c0_87, %c0_88] : memref<1x4x4x128xf32, #tpu.memory_space<vmem>>, vector<1x1x4x128xf32>
    %79 = vector.shape_cast %78 : vector<1x1x4x128xf32> to vector<4x128xf32>
    %c0_89 = arith.constant 0 : index
    %c0_90 = arith.constant 0 : index
    %80 = vector.load %arg6[%c0_89, %c0_90] : memref<4x128xf32, #tpu.memory_space<vmem>>, vector<4x128xf32>
    %81 = arith.subf %79, %80 : vector<4x128xf32>
    %c0_91 = arith.constant 0 : index
    %c0_92 = arith.constant 0 : index
    %82 = vector.load %arg7[%c0_91, %c0_92] : memref<4x128xf32, #tpu.memory_space<vmem>>, vector<4x128xf32>
    %83 = arith.mulf %81, %82 : vector<4x128xf32>
    %84 = arith.index_cast %c0_i32_85 : i32 to index
    %85 = memref.load %arg3[%84] : memref<4xf32, #tpu.memory_space<smem>>
    %86 = vector.broadcast %85 : f32 to vector<4x128xf32>
    %87 = arith.mulf %83, %86 : vector<4x128xf32>
    %88 = arith.index_cast %c0_i32_85 : i32 to index
    %89 = memref.load %arg4[%88] : memref<4xf32, #tpu.memory_space<smem>>
    %90 = vector.broadcast %89 : f32 to vector<4x128xf32>
    %91 = arith.addf %87, %90 : vector<4x128xf32>
    %c0_93 = arith.constant 0 : index
    %92 = arith.index_cast %c0_i32_85 : i32 to index
    %c0_94 = arith.constant 0 : index
    %c0_95 = arith.constant 0 : index
    %93 = vector.load %arg5[%c0_93, %92, %c0_94, %c0_95] : memref<1x4x4x128xf32, #tpu.memory_space<vmem>>, vector<1x1x4x128xf32>
    %94 = vector.shape_cast %93 : vector<1x1x4x128xf32> to vector<4x128xf32>
    %95 = vector.shape_cast %91 : vector<4x128xf32> to vector<1x1x4x128xf32>
    tpu.vector_store %arg5[%c0_93, %92, %c0_94, %c0_95], %95 {strides = array<i32>} : memref<1x4x4x128xf32, #tpu.memory_space<vmem>>, vector<1x1x4x128xf32>,
    %c1_i32_96 = arith.constant 1 : i32
    %c0_97 = arith.constant 0 : index
    %96 = arith.index_cast %c1_i32_96 : i32 to index
    %c0_98 = arith.constant 0 : index
    %c0_99 = arith.constant 0 : index
    %97 = vector.load %arg2[%c0_97, %96, %c0_98, %c0_99] : memref<1x4x4x128xf32, #tpu.memory_space<vmem>>, vector<1x1x4x128xf32>
    %98 = vector.shape_cast %97 : vector<1x1x4x128xf32> to vector<4x128xf32>
    %c0_100 = arith.constant 0 : index
    %c0_101 = arith.constant 0 : index
    %99 = vector.load %arg6[%c0_100, %c0_101] : memref<4x128xf32, #tpu.memory_space<vmem>>, vector<4x128xf32>
    %100 = arith.subf %98, %99 : vector<4x128xf32>
    %c0_102 = arith.constant 0 : index
    %c0_103 = arith.constant 0 : index
    %101 = vector.load %arg7[%c0_102, %c0_103] : memref<4x128xf32, #tpu.memory_space<vmem>>, vector<4x128xf32>
    %102 = arith.mulf %100, %101 : vector<4x128xf32>
    %103 = arith.index_cast %c1_i32_96 : i32 to index
    %104 = memref.load %arg3[%103] : memref<4xf32, #tpu.memory_space<smem>>
    %105 = vector.broadcast %104 : f32 to vector<4x128xf32>
    %106 = arith.mulf %102, %105 : vector<4x128xf32>
    %107 = arith.index_cast %c1_i32_96 : i32 to index
    %108 = memref.load %arg4[%107] : memref<4xf32, #tpu.memory_space<smem>>
    %109 = vector.broadcast %108 : f32 to vector<4x128xf32>
    %110 = arith.addf %106, %109 : vector<4x128xf32>
    %c0_104 = arith.constant 0 : index
    %111 = arith.index_cast %c1_i32_96 : i32 to index
    %c0_105 = arith.constant 0 : index
    %c0_106 = arith.constant 0 : index
    %112 = vector.load %arg5[%c0_104, %111, %c0_105, %c0_106] : memref<1x4x4x128xf32, #tpu.memory_space<vmem>>, vector<1x1x4x128xf32>
    %113 = vector.shape_cast %112 : vector<1x1x4x128xf32> to vector<4x128xf32>
    %114 = vector.shape_cast %110 : vector<4x128xf32> to vector<1x1x4x128xf32>
    tpu.vector_store %arg5[%c0_104, %111, %c0_105, %c0_106], %114 {strides = array<i32>} : memref<1x4x4x128xf32, #tpu.memory_space<vmem>>, vector<1x1x4x128xf32>,
    %c2_i32_107 = arith.constant 2 : i32
    %c0_108 = arith.constant 0 : index
    %115 = arith.index_cast %c2_i32_107 : i32 to index
    %c0_109 = arith.constant 0 : index
    %c0_110 = arith.constant 0 : index
    %116 = vector.load %arg2[%c0_108, %115, %c0_109, %c0_110] : memref<1x4x4x128xf32, #tpu.memory_space<vmem>>, vector<1x1x4x128xf32>
    %117 = vector.shape_cast %116 : vector<1x1x4x128xf32> to vector<4x128xf32>
    %c0_111 = arith.constant 0 : index
    %c0_112 = arith.constant 0 : index
    %118 = vector.load %arg6[%c0_111, %c0_112] : memref<4x128xf32, #tpu.memory_space<vmem>>, vector<4x128xf32>
    %119 = arith.subf %117, %118 : vector<4x128xf32>
    %c0_113 = arith.constant 0 : index
    %c0_114 = arith.constant 0 : index
    %120 = vector.load %arg7[%c0_113, %c0_114] : memref<4x128xf32, #tpu.memory_space<vmem>>, vector<4x128xf32>
    %121 = arith.mulf %119, %120 : vector<4x128xf32>
    %122 = arith.index_cast %c2_i32_107 : i32 to index
    %123 = memref.load %arg3[%122] : memref<4xf32, #tpu.memory_space<smem>>
    %124 = vector.broadcast %123 : f32 to vector<4x128xf32>
    %125 = arith.mulf %121, %124 : vector<4x128xf32>
    %126 = arith.index_cast %c2_i32_107 : i32 to index
    %127 = memref.load %arg4[%126] : memref<4xf32, #tpu.memory_space<smem>>
    %128 = vector.broadcast %127 : f32 to vector<4x128xf32>
    %129 = arith.addf %125, %128 : vector<4x128xf32>
    %c0_115 = arith.constant 0 : index
    %130 = arith.index_cast %c2_i32_107 : i32 to index
    %c0_116 = arith.constant 0 : index
    %c0_117 = arith.constant 0 : index
    %131 = vector.load %arg5[%c0_115, %130, %c0_116, %c0_117] : memref<1x4x4x128xf32, #tpu.memory_space<vmem>>, vector<1x1x4x128xf32>
    %132 = vector.shape_cast %131 : vector<1x1x4x128xf32> to vector<4x128xf32>
    %133 = vector.shape_cast %129 : vector<4x128xf32> to vector<1x1x4x128xf32>
    tpu.vector_store %arg5[%c0_115, %130, %c0_116, %c0_117], %133 {strides = array<i32>} : memref<1x4x4x128xf32, #tpu.memory_space<vmem>>, vector<1x1x4x128xf32>,
    %c3_i32_118 = arith.constant 3 : i32
    %c0_119 = arith.constant 0 : index
    %134 = arith.index_cast %c3_i32_118 : i32 to index
    %c0_120 = arith.constant 0 : index
    %c0_121 = arith.constant 0 : index
    %135 = vector.load %arg2[%c0_119, %134, %c0_120, %c0_121] : memref<1x4x4x128xf32, #tpu.memory_space<vmem>>, vector<1x1x4x128xf32>
    %136 = vector.shape_cast %135 : vector<1x1x4x128xf32> to vector<4x128xf32>
    %c0_122 = arith.constant 0 : index
    %c0_123 = arith.constant 0 : index
    %137 = vector.load %arg6[%c0_122, %c0_123] : memref<4x128xf32, #tpu.memory_space<vmem>>, vector<4x128xf32>
    %138 = arith.subf %136, %137 : vector<4x128xf32>
    %c0_124 = arith.constant 0 : index
    %c0_125 = arith.constant 0 : index
    %139 = vector.load %arg7[%c0_124, %c0_125] : memref<4x128xf32, #tpu.memory_space<vmem>>, vector<4x128xf32>
    %140 = arith.mulf %138, %139 : vector<4x128xf32>
    %141 = arith.index_cast %c3_i32_118 : i32 to index
    %142 = memref.load %arg3[%141] : memref<4xf32, #tpu.memory_space<smem>>
    %143 = vector.broadcast %142 : f32 to vector<4x128xf32>
    %144 = arith.mulf %140, %143 : vector<4x128xf32>
    %145 = arith.index_cast %c3_i32_118 : i32 to index
    %146 = memref.load %arg4[%145] : memref<4xf32, #tpu.memory_space<smem>>
    %147 = vector.broadcast %146 : f32 to vector<4x128xf32>
    %148 = arith.addf %144, %147 : vector<4x128xf32>
    %c0_126 = arith.constant 0 : index
    %149 = arith.index_cast %c3_i32_118 : i32 to index
    %c0_127 = arith.constant 0 : index
    %c0_128 = arith.constant 0 : index
    %150 = vector.load %arg5[%c0_126, %149, %c0_127, %c0_128] : memref<1x4x4x128xf32, #tpu.memory_space<vmem>>, vector<1x1x4x128xf32>
    %151 = vector.shape_cast %150 : vector<1x1x4x128xf32> to vector<4x128xf32>
    %152 = vector.shape_cast %148 : vector<4x128xf32> to vector<1x1x4x128xf32>
    tpu.vector_store %arg5[%c0_126, %149, %c0_127, %c0_128], %152 {strides = array<i32>} : memref<1x4x4x128xf32, #tpu.memory_space<vmem>>, vector<1x1x4x128xf32>,
    %c4_i32_129 = arith.constant 4 : i32
    return
  }
  func.func @transform_0(%arg0: i32, %arg1: i32) -> (i32, i32, i32, i32) {
    %c0_i32 = arith.constant 0 : i32
    %c0_i32_0 = arith.constant 0 : i32
    %c0_i32_1 = arith.constant 0 : i32
    return %arg1, %c0_i32, %arg0, %c0_i32_0 : i32, i32, i32, i32
  }
  func.func @transform_1(%arg0: i32, %arg1: i32) -> i32 {
    %c0_i32 = arith.constant 0 : i32
    %c0_i32_0 = arith.constant 0 : i32
    return %c0_i32 : i32
  }
  func.func @transform_2(%arg0: i32, %arg1: i32) -> i32 {
    %c0_i32 = arith.constant 0 : i32
    %c0_i32_0 = arith.constant 0 : i32
    return %c0_i32 : i32
  }
  func.func @transform_3(%arg0: i32, %arg1: i32) -> (i32, i32, i32, i32) {
    %c0_i32 = arith.constant 0 : i32
    %c0_i32_0 = arith.constant 0 : i32
    %c0_i32_1 = arith.constant 0 : i32
    return %arg1, %c0_i32, %arg0, %c0_i32_0 : i32, i32, i32, i32
  }
}

</mosaic_0001>

<bundles_post_ra>
// kernel: tpu_custom_call.1
= control target key start
LH: loop header
LB: loop body
LE: loop exit
PB: predicated region body
PF: predicated region fallthrough
CT: control target
= control target key end

     0   :  { %s1005_s0 = inlined_call_operand.hbm [shape: f32[2,4,4,128], index: 0, kind: input, shape index: {}]   ;;  %s1006_s1 = inlined_call_operand.hbm [shape: f32[4], index: 1, kind: input, shape index: {}]   ;;  %s1007_s2 = inlined_call_operand.vmem [shape: f32[4], index: 2, kind: input, shape index: {}]   ;;  %s1008_s3 = inlined_call_operand.hbm [shape: f32[2,4,4,128], index: 3, kind: output, shape index: {}]  }
   0x1   :  { %1009 = sst [smem:[#allocation16_spill]] %s1006_s1 }
   0x2   :  { %8 = vsyncpa [#allocation5], 0 }
   0x3   :  { %10 = vsyncpa [#allocation5 + $0x1], 0 }
   0x4   :  { %11 = vsyncpa [#allocation7], 0 }
   0x5   :  { %12 = vsyncpa [#allocation8], 0 }
   0x6   :  { %13 = vsyncpa [#allocation6], 0 }
   0x7   :  { %15 = vsyncpa [#allocation6 + $0x1], 0  ;;  %s805_s12 = smov 0   ;;  %s807_s13 = smov 0  }
   0x8   :  { %s809_s14 = smov 0   ;;  %s811_s15 = smov 0  }
   0x9   :  { %s813_s16 = smov 0   ;;  %s815_s17 = smov 0  }
   0xa LB: > { %s495_s18 = sadd.s32 4294967295, %s776_s17   ;;  %s496_s19 = sadd.s32 4294967294, %s776_s17   ;;  %s776_s17 = sphi %s815_s17, %s21_s17   ;;  %s772_s16 = sphi %s813_s16, %s1022_s16   ;;  %s768_s15 = sphi %s811_s15, %s1021_s15   ;;  %s764_s14 = sphi %s809_s14, %s1020_s14   ;;  %s760_s13 = sphi %s807_s13, %s1019_s13   ;;  %s756_s12 = sphi %s805_s12, %s1018_s12  }
   0xb   : > { %s42_s20 = sadd.s32 1, %s764_s14  ;;  %p49_p0 = scmp.ne.s32.totalorder %s764_s14, %s760_s13 }
   0xc   : > { %p50_p1 = scmp.eq.s32.totalorder %s776_s17, 0  ;;  %p55_p2 = scmp.ne.s32.totalorder %s760_s13, %s756_s12 }
   0xd   : > { %p843_p3 = scmp.eq.s32.totalorder %s495_s18, 0  ;;  %p123_p4 = scmp.eq.s32.totalorder %s495_s18, 1 }
   0xe   : > { %p847_p5 = por %p50_p1, %p49_p0  ;;  %p129_p6 = scmp.eq.s32.totalorder %s496_s19, 1 }
   0xf   : > { %p853_p7 = por %p843_p3, %p55_p2  ;;  %p857_p8 = por %p123_p4, %p49_p0 }
  0x10   : > { %p861_p9 = por %p129_p6, %p55_p2  ;;  %p497_p10 = scmp.ge.s32.totalorder %s776_s17, 1 }
  0x11   : > { %p136_p11 = scmp.lt.s32.totalorder %s776_s17, 3  ;;  %s1015_s1 = sld [smem:[#allocation16_spill]] }
  0x12   : > { %p500_p13 = scmp.ge.s32.totalorder %s776_s17, 2  ;;  %p563_p0 = scmp.lt.s32.totalorder %s776_s17, 2 }
  0x13   : > { %p870_p12 = pnand %p497_p10, %p136_p11  ;;  %s158_s5 = sshll.u32 %s1007_s2, 4  ;;  %s159_s5 = int_to_ptr.vmem [resolvable:$true] %s158_s5 }
  0x14   : > { %p883_p2 = pnand %p563_p0, %p847_p5  ;;  %s778_s7 = smov [#allocation9]  }
  0x15   : > { %p546_p1 = pneg %p870_p12  ;;  %s779_s8 = smov [#allocation10]  }
  0x16   : > { %s30_s9 = sadd.s32 1, %s772_s16  ;;  %s169_s10 = sand.u32 1, %s764_s14  }
  0x17   : > { %s148_s28 = sshll.u32 %s1015_s1, 4  ;;  %p547_p4 = pnand %p546_p1, %p843_p3  ;;  %s149_s28 = int_to_ptr.hbm [resolvable:$true] %s148_s28 }
  0x18   : > { %p31_p6 = scmp.ge.s32.totalorder %s30_s9, 2  ;;  %s501_s11 = sshll.u32 %s169_s10, 4 }
  0x19   : > { %549 = dma.hbm_to_smem (!%p547_p4), %s149_s28, 16, %s778_s7, [#allocation7]  }
  0x1a   : > { %552 = dma.vmem_to_smem (!%p547_p4), %s159_s5, 16, %s779_s8, [#allocation8]  }
  0x1b   : > { %s532_s18 = sshll.u32 %s772_s16, 4  ;;  %s1024_s9 = smov (%p31_p6, %s30_s9), 0 }
  0x1c   : > { %s179_s26 = scalar_lea.hbm %s1005_s0, %s532_s18  ;;  %s37_s27 = ssub.s32 %s772_s16, %s1024_s9 }
  0x1d   : > { %s180_s30 = sshll.u32 %s179_s26, 4  ;;  %p40_p5 = scmp.eq.s32.totalorder %s37_s27, 0  ;;  %s181_s30 = int_to_ptr.hbm [resolvable:$true] %s180_s30 }
  0x1e   : > { %s173_s28 = scalar_lea.vmem [#allocation4], %s501_s11  ;;  %s170_s7 = scalar_lea.sflag [#allocation5], %s169_s10 }
  0x1f   : > { %s182_s4 = sshll.u32 %s173_s28, 4  ;;  %s780_s8 = smov 64   ;;  %s183_s4 = int_to_ptr.vmem [resolvable:$true] %s182_s4 }
  0x20   : > { %s902_s5 = scalar_select %p40_p5, %s764_s14, %s42_s20  }
  0x21   : > { %s781_s1 = smov 4   ;;  %194 = sbr.rel (%p870_p12) target bundleno = 211 (0xd3), region = 32 }
  0x22   : > { %556 = dma.hbm_to_vmem [thread:$0]  (!%p883_p2), %s181_s30, 256, %s183_s4, %s170_s7, %s780_s8, %s780_s8, %s781_s1  }
  0x23   : > { %s909_s18 = sand.u32 (!%p870_p12), 1, %s760_s13  }
  0x24   : > { %s505_s11 = sshll.u32 (!%p870_p12), %s909_s18, 4  ;;  %s197_s19 = scalar_lea.sflag (!%p870_p12), [#allocation5], %s909_s18 }
  0x25   : > { %s915_s20 = scalar_lea.vmem (!%p870_p12), [#allocation4], %s505_s11 }
  0x26   : > { %739 = dma.done.wait (%p853_p7), %s197_s19, 256  }
  0x27   : > { %741 = vsyncadd (%p853_p7), %s197_s19, 4294967040 }
  0x28   : > { %743 = dma.done.wait (%p843_p3), [#allocation7], 16  }
  0x29   : > { %745 = vsyncadd (%p843_p3), [#allocation7], 4294967280 }
  0x2a   : > { %747 = dma.done.wait (%p843_p3), [#allocation8], 16  }
  0x2b   : > { %749 = vsyncadd (%p843_p3), [#allocation8], 4294967280 }
  0x2c   : > { %216 = sfence }
  0x2d   : > { %v782_v0 = vmov 0.0   ;;  %v237_v1 = vld [vmem:[%s915_s20] sm:$0xf]  ;;  %v509_v4 = vld [vmem:[%s915_s20 + $0x4] sm:$0xf]  ;;  %s937_s1 = sld [smem:[#allocation9]] }
  0x2e   : > { %235 = vst [vmem:[#allocation2] sm:$0xf] %v782_v0  ;;  %v510_v7 = vld [vmem:[%s915_s20 + $0x8] sm:$0xf]  ;;  %v511_v10 = vld [vmem:[%s915_s20 + $0xc] sm:$0xf] }
  0x2f   : > { %258 = vst [vmem:[#allocation3] sm:$0xf] %v782_v0  ;;  %v259_v15 = vld [vmem:[%s915_s20] sm:$0xf]  ;;  %v512_v21 = vld [vmem:[%s915_s20 + $0x4] sm:$0xf] }
  0x30   : > { %v513_v27 = vld [vmem:[%s915_s20 + $0x8] sm:$0xf]  ;;  %v514_v33 = vld [vmem:[%s915_s20 + $0xc] sm:$0xf]  ;;  %s939_s21 = sld [smem:[#allocation9 + $0x1]]  ;;  %s533_s27 = sshll.u32 %s768_s15, 4 }
  0x31   : > { %s941_s23 = sld [smem:[#allocation10]]  ;;  %v318_v62 = vld [vmem:[%s915_s20] sm:$0xf]  ;;  %v515_v63 = vld [vmem:[%s915_s20 + $0x4] sm:$0xf]  ;;  %s382_s28 = scalar_lea.hbm %s1008_s3, %s533_s27 }
  0x32   : > { %s943_s29 = sld [smem:[#allocation10 + $0x1]]  ;;  %v519_v0 = vld [vmem:[%s915_s20 + $0x8] sm:$0xf]  ;;  %s234_s4 = scalar_lea.vmem [#allocation11], %s505_s11 }
  0x33   : > { %s945_s6 = sld [smem:[#allocation9 + $0x2]]  ;;  %s383_s7 = sshll.u32 %s234_s4, 4  ;;  %s384_s7 = int_to_ptr.vmem [resolvable:$true] %s383_s7 }
  0x34   : > { %s947_s10 = sld [smem:[#allocation9 + $0x3]]  ;;  %s385_s8 = sshll.u32 %s382_s28, 4  ;;  %s386_s8 = int_to_ptr.hbm [resolvable:$true] %s385_s8 }
  0x35   : > { %v236_v2 = vld [vmem:[#allocation2] sm:$0xf]  ;;  %s950_s22 = sld [smem:[#allocation10 + $0x2]]  ;;  %s370_s19 = scalar_lea.sflag [#allocation6], %s909_s18 }
  0x36   : > { %v238_v3 = vadd.f32 %v237_v1, %v236_v2  ;;  %v262_v18 = vld [vmem:[#allocation3] sm:$0xf]  ;;  %s954_s26 = sld [smem:[#allocation10 + $0x3]]  ;;  %s700_s11 = sshra.s32 %s386_s8, 4  ;;  %s701_s11 = int_to_ptr.hbm [resolvable:$true] %s700_s11 }
  0x37   : > { %p707_p11 = scmp.lt.s32.totalorder %s701_s11, %s1008_s3 }
  0x38   : > { %239 = vst [vmem:[#allocation2] sm:$0xf] %v238_v3 }
  0x3f   : > { %v240_v5 = vld [vmem:[#allocation2] sm:$0xf] }
  0x40   : > { %v243_v6 = vadd.f32 %v509_v4, %v240_v5  ;;  %v523_v4 = vld [vmem:[%s915_s20 + $0xc] sm:$0xf]  ;;  %s702_s20 = scalar_lea.hbm %s701_s11, 16 }
  0x41   : > { %p703_p3 = scmp.ne.s32.totalorder %s701_s11, %s702_s20 }
  0x42   : > { %244 = vst [vmem:[#allocation2] sm:$0xf] %v243_v6 }
  0x43   : > { %p704_p7 = pnand %p703_p3, %p857_p8 }
  0x45   : > { %p705_p10 = pneg %p704_p7 }
  0x49   : > { %v245_v8 = vld [vmem:[#allocation2] sm:$0xf] }
  0x4a   : > { %v248_v9 = vadd.f32 %v510_v7, %v245_v8 }
  0x4c   : > { %249 = vst [vmem:[#allocation2] sm:$0xf] %v248_v9 }
  0x53   : > { %v250_v11 = vld [vmem:[#allocation2] sm:$0xf] }
  0x54   : > { %v253_v12 = vadd.f32 %v511_v10, %v250_v11  ;;  %v324_v10 = vstv %s937_s1 }
  0x56   : > { %254 = vst [vmem:[#allocation2] sm:$0xf] %v253_v12  ;;  %v336_v12 = vstv %s939_s21 }
  0x5d   : > { %v255_v13 = vld [vmem:[#allocation2] sm:$0xf] }
  0x5e   : > { %v256_v14 = vmul.f32 0.25, %v255_v13 }
  0x60   : > { %257 = vst [vmem:[#allocation2] sm:$0xf] %v256_v14  ;;  %v349_v14 = vstv %s945_s6 }
  0x67   : > { %v260_v16 = vld [vmem:[#allocation2] sm:$0xf] }
  0x68   : > { %v261_v17 = vsub.f32 %v259_v15, %v260_v16  ;;  %v267_v22 = vld [vmem:[#allocation2] sm:$0xf] }
  0x69   : > { %v268_v23 = vsub.f32 %v512_v21, %v267_v22  ;;  %v274_v28 = vld [vmem:[#allocation2] sm:$0xf]  ;;  %v327_v21 = vstv %s941_s23  ;;  %v339_v22 = vstv %s943_s29  ;;  %s706_s23 = scalar_lea.hbm %s1008_s3, 32 }
  0x6a   : > { %v263_v19 = vmul.f32 %v261_v17, %v261_v17  ;;  %v275_v29 = vsub.f32 %v513_v27, %v274_v28  ;;  %v281_v34 = vld [vmem:[#allocation2] sm:$0xf]  ;;  %v365_v28 = vstv %s954_s26  ;;  %p708_p12 = scmp.lt.s32.totalorder %s706_s23, %s702_s20 }
  0x6b   : > { %v270_v24 = vmul.f32 %v268_v23, %v268_v23  ;;  %v282_v35 = vsub.f32 %v514_v33, %v281_v34  ;;  %v319_v1 = vld [vmem:[#allocation2] sm:$0xf]  ;;  %v352_v23 = vstv %s950_s22 }
  0x6c   : > { %v264_v20 = vadd.f32 %v263_v19, %v262_v18  ;;  %v277_v30 = vmul.f32 %v275_v29, %v275_v29  ;;  %v331_v2 = vld [vmem:[#allocation2] sm:$0xf]  ;;  %v320_v6 = vsub.f32 %v318_v62, %v319_v1  ;;  %p709_p0 = por %p708_p12, %p707_p11 }
  0x6d   : > { %v284_v36 = vmul.f32 %v282_v35, %v282_v35  ;;  %v344_v3 = vld [vmem:[#allocation2] sm:$0xf]  ;;  %v332_v7 = vsub.f32 %v515_v63, %v331_v2 }
  0x6e   : > { %265 = vst [vmem:[#allocation3] sm:$0xf] %v264_v20  ;;  %v357_v5 = vld [vmem:[#allocation2] sm:$0xf]  ;;  %v345_v8 = vsub.f32 %v519_v0, %v344_v3  ;;  %v362_v20 = vstv %s947_s10  ;;  %p710_p1 = pnand %p709_p0, %p705_p10 }
  0x6f   : > { %v358_v15 = vsub.f32 %v523_v4, %v357_v5 }
  0x75   : > { %v269_v25 = vld [vmem:[#allocation3] sm:$0xf] }
  0x76   : > { %v271_v26 = vadd.f32 %v270_v24, %v269_v25 }
  0x78   : > { %272 = vst [vmem:[#allocation3] sm:$0xf] %v271_v26 }
  0x7f   : > { %v276_v31 = vld [vmem:[#allocation3] sm:$0xf] }
  0x80   : > { %v278_v32 = vadd.f32 %v277_v30, %v276_v31 }
  0x82   : > { %279 = vst [vmem:[#allocation3] sm:$0xf] %v278_v32 }
  0x89   : > { %v283_v37 = vld [vmem:[#allocation3] sm:$0xf] }
  0x8a   : > { %v285_v38 = vadd.f32 %v284_v36, %v283_v37 }
  0x8c   : > { %286 = vst [vmem:[#allocation3] sm:$0xf] %v285_v38 }
  0x93   : > { %v287_v39 = vld [vmem:[#allocation3] sm:$0xf] }
  0x94   : > { %v288_v40 = vmul.f32 0.25, %v287_v39 }
  0x96   : > { %622 = vrsqrt.f32 %v288_v40  ;;  %vm296_vm0 = vcmp.eq.f32.partialorder %v288_v40, inf  ;;  %v299_v48 = vand.u32 2147483648, %v288_v40  ;;  %vm298_vm1 = vcmp.eq.f32.partialorder %v288_v40, 0.0 }
  0x9c   : > { %v623_v41 = vpop.eup %622 }
  0x9d   : > { %v290_v42 = vmul.f32 %v623_v41, %v288_v40 }
  0x9f   : > { %v291_v43 = vmul.f32 %v623_v41, %v290_v42 }
  0xa1   : > { %v292_v44 = vmul.f32 0.5, %v291_v43 }
  0xa3   : > { %v293_v45 = vsub.f32 1.5, %v292_v44 }
  0xa5   : > { %v294_v46 = vmul.f32 %v623_v41, %v293_v45 }
  0xa7   : > { %v295_v47 = vmul.f32 %v294_v46, %v288_v40 }
  0xa9   : > { %v297_v49 = vsel %vm296_vm0, %v288_v40, %v295_v47 }
  0xaa   : > { %v300_v50 = vsel %vm298_vm1, %v299_v48, %v297_v49 }
  0xab   : > { %v301_v51 = vadd.f32 1e-05, %v300_v50 }
  0xad   : > { %624 = vrcp.f32 %v301_v51  ;;  %v313_v55 = vand.u32 2147483648, %v301_v51  ;;  %v311_v57 = vand.u32 2147483647, %v301_v51  ;;  %vm307_vm3 = vweird.f32 %v301_v51 }
  0xaf   : > { %v314_v59 = vor.u32 1.1754944e-38, %v313_v55  ;;  %vm312_vm5 = vcmp.eq.f32.partialorder %v311_v57, 8.507059e+37 }
  0xb3   : > { %v625_v52 = vpop.eup %624 }
  0xb4   : > { %v303_v53 = vmul.f32 %v625_v52, %v301_v51  ;;  %vm308_vm2 = vweird.f32 %v625_v52 }
  0xb5   : > { %vm309_vm4 = vmor %vm307_vm3, %vm308_vm2 }
  0xb6   : > { %v304_v54 = vsub.f32 1.0, %v303_v53 }
  0xb8   : > { %v305_v56 = vmul.f32 %v625_v52, %v304_v54 }
  0xba   : > { %v306_v58 = vadd.f32 %v625_v52, %v305_v56 }
  0xbc   : > { %v310_v60 = vsel %vm309_vm4, %v625_v52, %v306_v58 }
  0xbd   : > { %v315_v61 = vsel %vm312_vm5, %v314_v59, %v310_v60 }
  0xbe   : > { %317 = vst [vmem:[#allocation3] sm:$0xf] %v315_v61 }
  0xc5   : > { %v321_v9 = vld [vmem:[#allocation3] sm:$0xf] }
  0xc6   : > { %v333_v11 = vld [vmem:[#allocation3] sm:$0xf]  ;;  %v322_v16 = vmul.f32 %v321_v9, %v320_v6 }
  0xc7   : > { %v346_v13 = vld [vmem:[#allocation3] sm:$0xf]  ;;  %v334_v17 = vmul.f32 %v333_v11, %v332_v7 }
  0xc8   : > { %v347_v18 = vmul.f32 %v346_v13, %v345_v8  ;;  %v359_v19 = vld [vmem:[#allocation3] sm:$0xf]  ;;  %v325_v25 = vmul.f32 %v324_v10, %v322_v16 }
  0xc9   : > { %v360_v24 = vmul.f32 %v359_v19, %v358_v15  ;;  %v337_v26 = vmul.f32 %v336_v12, %v334_v17 }
  0xca   : > { %v350_v27 = vmul.f32 %v349_v14, %v347_v18  ;;  %v328_v30 = vadd.f32 %v327_v21, %v325_v25 }
  0xcb   : > { %v363_v29 = vmul.f32 %v362_v20, %v360_v24  ;;  %v340_v31 = vadd.f32 %v339_v22, %v337_v26 }
  0xcc   : > { %v353_v32 = vadd.f32 %v352_v23, %v350_v27  ;;  %329 = vst [vmem:[%s234_s4] sm:$0xf] %v328_v30 }
  0xcd   : > { %v366_v33 = vadd.f32 %v365_v28, %v363_v29  ;;  %518 = vst [vmem:[%s234_s4 + $0x4] sm:$0xf] %v340_v31 }
  0xce   : > { %522 = vst [vmem:[%s234_s4 + $0x8] sm:$0xf] %v353_v32 }
  0xcf   : > { %526 = vst [vmem:[%s234_s4 + $0xc] sm:$0xf] %v366_v33 }
  0xd0   : > { %713 = shalt.err (!%p710_p1)
}
  0xd1   : > { %s783_s18 = smov 64   ;;  %s784_s10 = smov 4  }
  0xd2   : > { %544 = dma.vmem_to_hbm [thread:$0]  (%p857_p8), %s384_s7, 256, %s386_s8, %s370_s19, %s783_s18, %s783_s18, %s784_s10  }
  0xd3 PF: > { %s400_s22 = sand.u32 1, %s756_s12   ;;  %p558_p2 = pnand %p500_p13, %p861_p9 }
  0xd4   : > { %s401_s26 = scalar_lea.sflag [#allocation6], %s400_s22 }
  0xd5   : > { %p559_p4 = pneg %p558_p2 }
  0xd7   : > { %751 = dma.done.wait (%p559_p4), %s401_s26, 256  }
  0xd8   : > { %753 = vsyncadd (%p559_p4), %s401_s26, 4294967040  ;;  %s21_s17 = sadd.s32 1, %s776_s17   ;;  %s1018_s12 = smov %s760_s13 }
  0xd9   : > { %p18_p6 = scmp.ge.s32.totalorder %s21_s17, 4   ;;  %s1019_s13 = smov %s764_s14 }
  0xda   : > { %s1020_s14 = smov %s902_s5  ;;  %s1021_s15 = smov %s772_s16 }
  0xdb   : > { %s1022_s16 = smov %s1024_s9  ;;  %20 = sbr.rel (!%p18_p6) target bundleno = 10 (0xa), region = 93 }
  0xe0   :  { %407 = vsyncpa [#allocation5], 1 }
  0xe1   :  { %409 = vsyncpa [#allocation5 + $0x1], 1 }
  0xe2   :  { %410 = vsyncpa [#allocation6], 1 }
  0xe3   :  { %412 = vsyncpa [#allocation6 + $0x1], 1 }
  0xe4   :  { %413 = vsyncpa [#allocation7], 1 }
  0xe5   :  { %415 = vsyncpa [#allocation7 + $0x1], 1 }
  0xe6   :  { %416 = vsyncpa [#allocation8], 1 }
  0xe7   :  { %418 = vsyncpa [#allocation8 + $0x1], 1 }

</bundles_post_ra>
